<compile_context>
chip_gen: v7x
topology: tpu7x:2x2x1
jax: 0.10.0
libtpu: 0.0.40
codegen_flags: <defaults>
</compile_context>

<pallas_src>
import jax
import jax.numpy as jnp
from jax.experimental import pallas as pl
from jax.experimental.pallas import tpu as pltpu

IN_FEATS = 121
OUT_FEATS = 27
IN_PAD = 128    # 121 padded up to a full lane width
OUT_PAD = 128   # 27 padded up to a full lane width
DIMS = [(121, 256), (256, 512), (512, 256), (256, 128), (128, 27)]


def _round_up(n, m):
    return ((n + m - 1) // m) * m


def dqn_kernel(x_ref,
               w1_ref, b1_ref,
               w2_ref, b2_ref,
               w3_ref, b3_ref,
               w4_ref, b4_ref,
               w5_ref, b5_ref,
               out_ref):
    # x_ref: (TB, 128) f32 tile; weights bf16 (VMEM-resident), biases f32 (1, N).
    # MXU matmuls take bf16 inputs with f32 accumulation; bias add / ReLU stay f32.
    h = x_ref[...]

    h = jnp.dot(h.astype(jnp.bfloat16), w1_ref[...],
                preferred_element_type=jnp.float32) + b1_ref[...]
    h = jnp.maximum(h, 0.0)

    h = jnp.dot(h.astype(jnp.bfloat16), w2_ref[...],
                preferred_element_type=jnp.float32) + b2_ref[...]
    h = jnp.maximum(h, 0.0)

    h = jnp.dot(h.astype(jnp.bfloat16), w3_ref[...],
                preferred_element_type=jnp.float32) + b3_ref[...]
    h = jnp.maximum(h, 0.0)

    h = jnp.dot(h.astype(jnp.bfloat16), w4_ref[...],
                preferred_element_type=jnp.float32) + b4_ref[...]
    h = jnp.maximum(h, 0.0)

    h = jnp.dot(h.astype(jnp.bfloat16), w5_ref[...],
                preferred_element_type=jnp.float32) + b5_ref[...]
    out_ref[...] = h.astype(out_ref.dtype)


def dqn_forward(x, params, *, tb=256):
    """x: (B, 121) float32. params: list of (W, b) with W (in, out) f32, b (1, out) f32."""
    B, f_in = x.shape
    assert f_in == IN_FEATS

    # --- pad input features 121 -> 128 and batch to a multiple of the batch tile ---
    TB = min(tb, _round_up(B, 8))          # keep tiles moderate; small B -> small tile
    B_pad = _round_up(B, TB)
    x_p = jnp.pad(x.astype(jnp.float32),
                  ((0, B_pad - B), (0, IN_PAD - IN_FEATS)))

    # --- prepare weights: pad W1 rows (121->128), pad W5/b5 cols (27->128), bf16 weights ---
    (w1, b1), (w2, b2), (w3, b3), (w4, b4), (w5, b5) = params
    w1p = jnp.pad(w1, ((0, IN_PAD - w1.shape[0]), (0, 0)))
    w5p = jnp.pad(w5, ((0, 0), (0, OUT_PAD - w5.shape[1])))
    b5p = jnp.pad(b5, ((0, 0), (0, OUT_PAD - b5.shape[1])))

    ws = [w.astype(jnp.bfloat16) for w in (w1p, w2, w3, w4, w5p)]
    bs = [b.astype(jnp.float32) for b in (b1, b2, b3, b4, b5p)]
    flat = []
    for w, b in zip(ws, bs):
        flat.extend([w, b])

    grid = (B_pad // TB,)

    def resident(arr):
        # full-array block, same block every grid step -> DMA'd once, stays in VMEM
        return pl.BlockSpec(arr.shape, lambda i: (0, 0))

    in_specs = [pl.BlockSpec((TB, IN_PAD), lambda i: (i, 0))] + [resident(a) for a in flat]
    out_specs = pl.BlockSpec((TB, OUT_PAD), lambda i: (i, 0))

    flops = 2 * B_pad * sum(IN_PAD if i == 0 else d_in for i, (d_in, _) in enumerate(DIMS))  # rough
    flops = 2 * B_pad * (IN_PAD * 256 + 256 * 512 + 512 * 256 + 256 * 128 + 128 * OUT_PAD)
    bytes_accessed = (x_p.size * 4
                      + sum(int(a.size) * a.dtype.itemsize for a in flat)
                      + B_pad * OUT_PAD * 4)

    out = pl.pallas_call(
        dqn_kernel,
        out_shape=jax.ShapeDtypeStruct((B_pad, OUT_PAD), jnp.float32),
        grid=grid,
        in_specs=in_specs,
        out_specs=out_specs,
        compiler_params=pltpu.CompilerParams(dimension_semantics=("parallel",)),
        cost_estimate=pl.CostEstimate(flops=flops, transcendentals=0,
                                      bytes_accessed=bytes_accessed),
    )(x_p, *flat)

    return out[:B, :OUT_FEATS]


def init_params(key):
    """Deterministic init matching PyTorch nn.Linear default:
    U(-1/sqrt(fan_in), 1/sqrt(fan_in)) for both weight and bias."""
    params = []
    for i, (fan_in, fan_out) in enumerate(DIMS):
        kw, kb = jax.random.split(jax.random.fold_in(key, i))
        bound = 1.0 / (fan_in ** 0.5)
        w = jax.random.uniform(kw, (fan_in, fan_out), jnp.float32, -bound, bound)
        b = jax.random.uniform(kb, (1, fan_out), jnp.float32, -bound, bound)
        params.append((w, b))
    return params


def reference_forward(x, params):
    """Pure-JAX reference mirroring the kernel numerics (bf16 dot inputs, f32 accum)."""
    h = x.astype(jnp.float32)
    for i, (w, b) in enumerate(params):
        h = jnp.dot(h.astype(jnp.bfloat16), w.astype(jnp.bfloat16),
                    preferred_element_type=jnp.float32) + b
        if i < len(params) - 1:
            h = jnp.maximum(h, 0.0)
    return h


if __name__ == "__main__":
    key = jax.random.PRNGKey(0)
    params = init_params(key)

    B = 8
    x = jax.random.normal(jax.random.fold_in(key, 100), (B, IN_FEATS), jnp.float32)

    out = dqn_forward(x, params)
    out = jax.block_until_ready(out)

    ref = reference_forward(x, params)
    assert out.shape == (B, OUT_FEATS), out.shape
    assert jnp.allclose(out, ref, atol=1e-2, rtol=1e-2), "mismatch vs reference"

    print("KERNEL_OK")
</pallas_src>

<mosaic_0001>
module attributes {stable_mosaic.version = 11 : i64} {
  func.func @dqn_kernel(%arg0: i32, %arg1: memref<8x128xf32, #tpu.memory_space<vmem>>, %arg2: memref<128x256xbf16, #tpu.memory_space<vmem>>, %arg3: memref<1x256xf32, #tpu.memory_space<vmem>>, %arg4: memref<256x512xbf16, #tpu.memory_space<vmem>>, %arg5: memref<1x512xf32, #tpu.memory_space<vmem>>, %arg6: memref<512x256xbf16, #tpu.memory_space<vmem>>, %arg7: memref<1x256xf32, #tpu.memory_space<vmem>>, %arg8: memref<256x128xbf16, #tpu.memory_space<vmem>>, %arg9: memref<1x128xf32, #tpu.memory_space<vmem>>, %arg10: memref<128x128xbf16, #tpu.memory_space<vmem>>, %arg11: memref<1x128xf32, #tpu.memory_space<vmem>>, %arg12: memref<8x128xf32, #tpu.memory_space<vmem>>) attributes {dimension_semantics = [#tpu.dimension_semantics<parallel>], iteration_bounds = array<i64: 1>, scalar_prefetch = 0 : i64, scratch_operands = 0 : i64, tpu.core_type = #tpu.core_type<tc>, window_params = [{transform_indices = @transform_0, window_bounds = array<i64: 8, 128>}, {pipeline_mode = #tpu.pipeline_mode<synchronous>, transform_indices = @transform_1, window_bounds = array<i64: 128, 256>}, {pipeline_mode = #tpu.pipeline_mode<synchronous>, transform_indices = @transform_2, window_bounds = array<i64: 1, 256>}, {pipeline_mode = #tpu.pipeline_mode<synchronous>, transform_indices = @transform_3, window_bounds = array<i64: 256, 512>}, {pipeline_mode = #tpu.pipeline_mode<synchronous>, transform_indices = @transform_4, window_bounds = array<i64: 1, 512>}, {pipeline_mode = #tpu.pipeline_mode<synchronous>, transform_indices = @transform_5, window_bounds = array<i64: 512, 256>}, {pipeline_mode = #tpu.pipeline_mode<synchronous>, transform_indices = @transform_6, window_bounds = array<i64: 1, 256>}, {pipeline_mode = #tpu.pipeline_mode<synchronous>, transform_indices = @transform_7, window_bounds = array<i64: 256, 128>}, {pipeline_mode = #tpu.pipeline_mode<synchronous>, transform_indices = @transform_8, window_bounds = array<i64: 1, 128>}, {pipeline_mode = #tpu.pipeline_mode<synchronous>, transform_indices = @transform_9, window_bounds = array<i64: 128, 128>}, {pipeline_mode = #tpu.pipeline_mode<synchronous>, transform_indices = @transform_10, window_bounds = array<i64: 1, 128>}, {transform_indices = @transform_11, window_bounds = array<i64: 8, 128>}]} {
    %c0 = arith.constant 0 : index
    %c0_0 = arith.constant 0 : index
    %0 = vector.load %arg1[%c0, %c0_0] : memref<8x128xf32, #tpu.memory_space<vmem>>, vector<8x128xf32>
    %1 = arith.truncf %0 : vector<8x128xf32> to vector<8x128xbf16>
    %c0_1 = arith.constant 0 : index
    %c0_2 = arith.constant 0 : index
    %2 = vector.load %arg2[%c0_1, %c0_2] : memref<128x256xbf16, #tpu.memory_space<vmem>>, vector<128x256xbf16>
    %cst = arith.constant dense<0.000000e+00> : vector<8x256xf32>
    %3 = tpu.matmul %1, %2, %cst {dimension_numbers = #tpu.dot_dimension_numbers<[1], [0], [0], [1], [0, 0, 1, 1], [], []>} : vector<8x128xbf16>, vector<128x256xbf16>, vector<8x256xf32> -> vector<8x256xf32>
    %c0_3 = arith.constant 0 : index
    %c0_4 = arith.constant 0 : index
    %4 = vector.load %arg3[%c0_3, %c0_4] : memref<1x256xf32, #tpu.memory_space<vmem>>, vector<1x256xf32>
    %5 = vector.broadcast %4 : vector<1x256xf32> to vector<8x256xf32>
    %6 = arith.addf %3, %5 : vector<8x256xf32>
    %cst_5 = arith.constant 0.000000e+00 : f32
    %7 = vector.broadcast %cst_5 : f32 to vector<8x256xf32>
    %8 = arith.maximumf %6, %7 : vector<8x256xf32>
    %9 = arith.truncf %8 : vector<8x256xf32> to vector<8x256xbf16>
    %c0_6 = arith.constant 0 : index
    %c0_7 = arith.constant 0 : index
    %10 = vector.load %arg4[%c0_6, %c0_7] : memref<256x512xbf16, #tpu.memory_space<vmem>>, vector<256x512xbf16>
    %cst_8 = arith.constant dense<0.000000e+00> : vector<8x512xf32>
    %11 = tpu.matmul %9, %10, %cst_8 {dimension_numbers = #tpu.dot_dimension_numbers<[1], [0], [0], [1], [0, 0, 1, 1], [], []>} : vector<8x256xbf16>, vector<256x512xbf16>, vector<8x512xf32> -> vector<8x512xf32>
    %c0_9 = arith.constant 0 : index
    %c0_10 = arith.constant 0 : index
    %12 = vector.load %arg5[%c0_9, %c0_10] : memref<1x512xf32, #tpu.memory_space<vmem>>, vector<1x512xf32>
    %13 = vector.broadcast %12 : vector<1x512xf32> to vector<8x512xf32>
    %14 = arith.addf %11, %13 : vector<8x512xf32>
    %cst_11 = arith.constant 0.000000e+00 : f32
    %15 = vector.broadcast %cst_11 : f32 to vector<8x512xf32>
    %16 = arith.maximumf %14, %15 : vector<8x512xf32>
    %17 = arith.truncf %16 : vector<8x512xf32> to vector<8x512xbf16>
    %c0_12 = arith.constant 0 : index
    %c0_13 = arith.constant 0 : index
    %18 = vector.load %arg6[%c0_12, %c0_13] : memref<512x256xbf16, #tpu.memory_space<vmem>>, vector<512x256xbf16>
    %cst_14 = arith.constant dense<0.000000e+00> : vector<8x256xf32>
    %19 = tpu.matmul %17, %18, %cst_14 {dimension_numbers = #tpu.dot_dimension_numbers<[1], [0], [0], [1], [0, 0, 1, 1], [], []>} : vector<8x512xbf16>, vector<512x256xbf16>, vector<8x256xf32> -> vector<8x256xf32>
    %c0_15 = arith.constant 0 : index
    %c0_16 = arith.constant 0 : index
    %20 = vector.load %arg7[%c0_15, %c0_16] : memref<1x256xf32, #tpu.memory_space<vmem>>, vector<1x256xf32>
    %21 = vector.broadcast %20 : vector<1x256xf32> to vector<8x256xf32>
    %22 = arith.addf %19, %21 : vector<8x256xf32>
    %cst_17 = arith.constant 0.000000e+00 : f32
    %23 = vector.broadcast %cst_17 : f32 to vector<8x256xf32>
    %24 = arith.maximumf %22, %23 : vector<8x256xf32>
    %25 = arith.truncf %24 : vector<8x256xf32> to vector<8x256xbf16>
    %c0_18 = arith.constant 0 : index
    %c0_19 = arith.constant 0 : index
    %26 = vector.load %arg8[%c0_18, %c0_19] : memref<256x128xbf16, #tpu.memory_space<vmem>>, vector<256x128xbf16>
    %cst_20 = arith.constant dense<0.000000e+00> : vector<8x128xf32>
    %27 = tpu.matmul %25, %26, %cst_20 {dimension_numbers = #tpu.dot_dimension_numbers<[1], [0], [0], [1], [0, 0, 1, 1], [], []>} : vector<8x256xbf16>, vector<256x128xbf16>, vector<8x128xf32> -> vector<8x128xf32>
    %c0_21 = arith.constant 0 : index
    %c0_22 = arith.constant 0 : index
    %28 = vector.load %arg9[%c0_21, %c0_22] : memref<1x128xf32, #tpu.memory_space<vmem>>, vector<1x128xf32>
    %29 = vector.broadcast %28 : vector<1x128xf32> to vector<8x128xf32>
    %30 = arith.addf %27, %29 : vector<8x128xf32>
    %cst_23 = arith.constant 0.000000e+00 : f32
    %31 = vector.broadcast %cst_23 : f32 to vector<8x128xf32>
    %32 = arith.maximumf %30, %31 : vector<8x128xf32>
    %33 = arith.truncf %32 : vector<8x128xf32> to vector<8x128xbf16>
    %c0_24 = arith.constant 0 : index
    %c0_25 = arith.constant 0 : index
    %34 = vector.load %arg10[%c0_24, %c0_25] : memref<128x128xbf16, #tpu.memory_space<vmem>>, vector<128x128xbf16>
    %cst_26 = arith.constant dense<0.000000e+00> : vector<8x128xf32>
    %35 = tpu.matmul %33, %34, %cst_26 {dimension_numbers = #tpu.dot_dimension_numbers<[1], [0], [0], [1], [0, 0, 1, 1], [], []>} : vector<8x128xbf16>, vector<128x128xbf16>, vector<8x128xf32> -> vector<8x128xf32>
    %c0_27 = arith.constant 0 : index
    %c0_28 = arith.constant 0 : index
    %36 = vector.load %arg11[%c0_27, %c0_28] : memref<1x128xf32, #tpu.memory_space<vmem>>, vector<1x128xf32>
    %37 = vector.broadcast %36 : vector<1x128xf32> to vector<8x128xf32>
    %38 = arith.addf %35, %37 : vector<8x128xf32>
    %c0_29 = arith.constant 0 : index
    %c0_30 = arith.constant 0 : index
    %39 = vector.load %arg12[%c0_29, %c0_30] : memref<8x128xf32, #tpu.memory_space<vmem>>, vector<8x128xf32>
    tpu.vector_store %arg12[%c0_29, %c0_30], %38 {strides = array<i32>} : memref<8x128xf32, #tpu.memory_space<vmem>>, vector<8x128xf32>,
    return
  }
  func.func @transform_0(%arg0: i32) -> (i32, i32) {
    %c0_i32 = arith.constant 0 : i32
    %c0_i32_0 = arith.constant 0 : i32
    return %arg0, %c0_i32 : i32, i32
  }
  func.func @transform_1(%arg0: i32) -> (i32, i32) {
    %c0_i32 = arith.constant 0 : i32
    %c0_i32_0 = arith.constant 0 : i32
    %c0_i32_1 = arith.constant 0 : i32
    return %c0_i32, %c0_i32_0 : i32, i32
  }
  func.func @transform_2(%arg0: i32) -> (i32, i32) {
    %c0_i32 = arith.constant 0 : i32
    %c0_i32_0 = arith.constant 0 : i32
    %c0_i32_1 = arith.constant 0 : i32
    return %c0_i32, %c0_i32_0 : i32, i32
  }
  func.func @transform_3(%arg0: i32) -> (i32, i32) {
    %c0_i32 = arith.constant 0 : i32
    %c0_i32_0 = arith.constant 0 : i32
    %c0_i32_1 = arith.constant 0 : i32
    return %c0_i32, %c0_i32_0 : i32, i32
  }
  func.func @transform_4(%arg0: i32) -> (i32, i32) {
    %c0_i32 = arith.constant 0 : i32
    %c0_i32_0 = arith.constant 0 : i32
    %c0_i32_1 = arith.constant 0 : i32
    return %c0_i32, %c0_i32_0 : i32, i32
  }
  func.func @transform_5(%arg0: i32) -> (i32, i32) {
    %c0_i32 = arith.constant 0 : i32
    %c0_i32_0 = arith.constant 0 : i32
    %c0_i32_1 = arith.constant 0 : i32
    return %c0_i32, %c0_i32_0 : i32, i32
  }
  func.func @transform_6(%arg0: i32) -> (i32, i32) {
    %c0_i32 = arith.constant 0 : i32
    %c0_i32_0 = arith.constant 0 : i32
    %c0_i32_1 = arith.constant 0 : i32
    return %c0_i32, %c0_i32_0 : i32, i32
  }
  func.func @transform_7(%arg0: i32) -> (i32, i32) {
    %c0_i32 = arith.constant 0 : i32
    %c0_i32_0 = arith.constant 0 : i32
    %c0_i32_1 = arith.constant 0 : i32
    return %c0_i32, %c0_i32_0 : i32, i32
  }
  func.func @transform_8(%arg0: i32) -> (i32, i32) {
    %c0_i32 = arith.constant 0 : i32
    %c0_i32_0 = arith.constant 0 : i32
    %c0_i32_1 = arith.constant 0 : i32
    return %c0_i32, %c0_i32_0 : i32, i32
  }
  func.func @transform_9(%arg0: i32) -> (i32, i32) {
    %c0_i32 = arith.constant 0 : i32
    %c0_i32_0 = arith.constant 0 : i32
    %c0_i32_1 = arith.constant 0 : i32
    return %c0_i32, %c0_i32_0 : i32, i32
  }
  func.func @transform_10(%arg0: i32) -> (i32, i32) {
    %c0_i32 = arith.constant 0 : i32
    %c0_i32_0 = arith.constant 0 : i32
    %c0_i32_1 = arith.constant 0 : i32
    return %c0_i32, %c0_i32_0 : i32, i32
  }
  func.func @transform_11(%arg0: i32) -> (i32, i32) {
    %c0_i32 = arith.constant 0 : i32
    %c0_i32_0 = arith.constant 0 : i32
    return %arg0, %c0_i32 : i32, i32
  }
}

</mosaic_0001>

<bundles_post_ra>
// kernel: tpu_custom_call.1
= control target key start
LH: loop header
LB: loop body
LE: loop exit
PB: predicated region body
PF: predicated region fallthrough
CT: control target
= control target key end

     0   :  { %16 = vsyncpa [#allocation3], 0  ;;  %s2407_s0 = inlined_call_operand.hbm [shape: f32[8,128], index: 0, kind: input, shape index: {}]   ;;  %s2408_s1 = inlined_call_operand.hbm [shape: bf16[128,256], index: 1, kind: input, shape index: {}]   ;;  %s2409_s2 = inlined_call_operand.vmem [shape: f32[1,256], index: 2, kind: input, shape index: {}]   ;;  %s2410_s3 = inlined_call_operand.hbm [shape: bf16[256,512], index: 3, kind: input, shape index: {}]   ;;  %s2411_s4 = inlined_call_operand.vmem [shape: f32[1,512], index: 4, kind: input, shape index: {}]   ;;  %s2412_s5 = inlined_call_operand.hbm [shape: bf16[512,256], index: 5, kind: input, shape index: {}]   ;;  %s2413_s6 = inlined_call_operand.vmem [shape: f32[1,256], index: 6, kind: input, shape index: {}]   ;;  %s2414_s7 = inlined_call_operand.hbm [shape: bf16[256,128], index: 7, kind: input, shape index: {}]   ;;  %s2415_s8 = inlined_call_operand.vmem [shape: f32[1,128], index: 8, kind: input, shape index: {}]   ;;  %s2416_s9 = inlined_call_operand.hbm [shape: bf16[128,128], index: 9, kind: input, shape index: {}]   ;;  %s2417_s10 = inlined_call_operand.vmem [shape: f32[1,128], index: 10, kind: input, shape index: {}]   ;;  %s2418_s11 = inlined_call_operand.hbm [shape: f32[8,128], index: 11, kind: output, shape index: {}]  }
   0x1   :  { %17 = vsyncpa [#allocation6], 0 }
   0x2   :  { %18 = vsyncpa [#allocation9], 0 }
   0x3   :  { %19 = vsyncpa [#allocation12], 0 }
   0x4   :  { %20 = vsyncpa [#allocation4], 0  ;;  %s2207_s17 = smov [#allocation5]   ;;  %s2043_s21 = scalar_lea.hbm %s2408_s1, 2048 }
   0x5   :  { %s36_s18 = sshll.u32 %s2207_s17, 4  ;;  %p2044_p0 = scmp.ne.s32.totalorder %s2408_s1, %s2043_s21  ;;  %s37_s18 = int_to_ptr.vmem [resolvable:$true] %s36_s18 }
   0x6   :  { %p2047_p1 = scmp.lt.u32.totalorder %s2043_s21, %s2408_s1 }
   0x8   :  { %p2049_p2 = pnand %p2047_p1, %p2044_p0 }
   0xa   :  { %2052 = shalt.err (!%p2049_p2)
}
   0xb   :  { %s2053_s26 = scalar_lea.vmem %s37_s18, 2048  ;;  %p2058_p4 = scmp.lt.s32.totalorder %s37_s18, %s37_s18 }
   0xc   :  { %p2054_p3 = scmp.ne.s32.totalorder %s37_s18, %s2053_s26  ;;  %p2059_p5 = scmp.lt.s32.totalorder %s2053_s26, %s2053_s26 }
   0xe   :  { %p2060_p6 = por %p2059_p5, %p2058_p4 }
  0x10   :  { %p2061_p7 = pnand %p2060_p6, %p2054_p3 }
  0x12   :  { %2064 = shalt.err (!%p2061_p7)
}
  0x13   :  { %s2208_s27 = smov 128   ;;  %s2209_s28 = smov 8  }
  0x14   :  { %42 = dma.hbm_to_vmem [thread:$0]  %s2408_s1, 2048, %s37_s18, [#allocation6], %s2208_s27, %s2208_s27, %s2209_s28  }
  0x15   :  { %s2210_s12 = smov [#allocation8]   ;;  %s2211_s14 = smov [#allocation2]  }
  0x16   :  { %s64_s13 = sshll.u32 %s2210_s12, 4  ;;  %s27_s15 = sshll.u32 %s2211_s14, 4  ;;  %s65_s13 = int_to_ptr.vmem [resolvable:$true] %s64_s13  ;;  %s28_s15 = int_to_ptr.vmem [resolvable:$true] %s27_s15 }
  0x17   :  { %s2065_s19 = scalar_lea.hbm %s2412_s5, 8192 }
  0x18   :  { %p2066_p8 = scmp.ne.s32.totalorder %s2412_s5, %s2065_s19  ;;  %p2069_p9 = scmp.lt.u32.totalorder %s2065_s19, %s2412_s5 }
  0x1a   :  { %p2071_p10 = pnand %p2069_p9, %p2066_p8 }
  0x1c   :  { %2074 = shalt.err (!%p2071_p10)
}
  0x1d   :  { %s2075_s1 = scalar_lea.vmem %s65_s13, 8192  ;;  %p2080_p12 = scmp.lt.s32.totalorder %s65_s13, %s65_s13 }
  0x1e   :  { %p2076_p11 = scmp.ne.s32.totalorder %s65_s13, %s2075_s1  ;;  %p2081_p13 = scmp.lt.s32.totalorder %s2075_s1, %s2075_s1 }
  0x20   :  { %p2082_p0 = por %p2081_p13, %p2080_p12 }
  0x22   :  { %p2083_p1 = pnand %p2082_p0, %p2076_p11 }
  0x24   :  { %2086 = shalt.err (!%p2083_p1)
}
  0x25   :  { %70 = dma.hbm_to_vmem [thread:$0]  %s2412_s5, 8192, %s65_s13, [#allocation9], %s2208_s27, %s2208_s27, %s2209_s28  }
  0x26   :  { %s2087_s29 = scalar_lea.hbm %s2407_s0, 128 }
  0x27   :  { %p2088_p2 = scmp.ne.s32.totalorder %s2407_s0, %s2087_s29  ;;  %p2091_p3 = scmp.lt.u32.totalorder %s2087_s29, %s2407_s0 }
  0x29   :  { %p2093_p4 = pnand %p2091_p3, %p2088_p2 }
  0x2b   :  { %2096 = shalt.err (!%p2093_p4)
}
  0x2c   :  { %s2097_s17 = scalar_lea.vmem %s28_s15, 128  ;;  %p2102_p6 = scmp.lt.s32.totalorder %s28_s15, %s28_s15 }
  0x2d   :  { %p2098_p5 = scmp.ne.s32.totalorder %s28_s15, %s2097_s17  ;;  %p2103_p7 = scmp.lt.s32.totalorder %s2097_s17, %s2097_s17 }
  0x2f   :  { %p2104_p8 = por %p2103_p7, %p2102_p6 }
  0x31   :  { %p2105_p9 = pnand %p2104_p8, %p2098_p5 }
  0x33   :  { %2108 = shalt.err (!%p2105_p9)
}
  0x34   :  { %30 = dma.hbm_to_vmem [thread:$0]  %s2407_s0, 128, %s28_s15, [#allocation3]  }
  0x35   :  { %s2212_s28 = smov [#allocation7]   ;;  %s2109_s21 = scalar_lea.hbm %s2410_s3, 8192 }
  0x36   :  { %s50_s13 = sshll.u32 %s2212_s28, 4  ;;  %p2110_p10 = scmp.ne.s32.totalorder %s2410_s3, %s2109_s21  ;;  %s51_s13 = int_to_ptr.vmem [resolvable:$true] %s50_s13 }
  0x37   :  { %p2113_p11 = scmp.lt.u32.totalorder %s2109_s21, %s2410_s3 }
  0x39   :  { %p2115_p12 = pnand %p2113_p11, %p2110_p10 }
  0x3b   :  { %2118 = shalt.err (!%p2115_p12)
}
  0x3c   :  { %s2119_s24 = scalar_lea.vmem %s51_s13, 8192  ;;  %p2124_p0 = scmp.lt.s32.totalorder %s51_s13, %s51_s13 }
  0x3d   :  { %p2120_p13 = scmp.ne.s32.totalorder %s51_s13, %s2119_s24  ;;  %p2125_p1 = scmp.lt.s32.totalorder %s2119_s24, %s2119_s24 }
  0x3f   :  { %p2126_p2 = por %p2125_p1, %p2124_p0 }
  0x41   :  { %p2127_p3 = pnand %p2126_p2, %p2120_p13 }
  0x43   :  { %2130 = shalt.err (!%p2127_p3)
}
  0x44   :  { %s2213_s0 = smov 256   ;;  %s2214_s15 = smov 16  }
  0x45   :  { %56 = dma.hbm_to_vmem [thread:$0]  %s2410_s3, 8192, %s51_s13, [#allocation6], %s2213_s0, %s2213_s0, %s2214_s15  }
  0x46   :  { %s2215_s29 = smov [#allocation10]   ;;  %s2131_s16 = scalar_lea.hbm %s2414_s7, 2048 }
  0x47   :  { %s78_s30 = sshll.u32 %s2215_s29, 4  ;;  %p2132_p4 = scmp.ne.s32.totalorder %s2414_s7, %s2131_s16  ;;  %s79_s30 = int_to_ptr.vmem [resolvable:$true] %s78_s30 }
  0x48   :  { %p2135_p5 = scmp.lt.u32.totalorder %s2131_s16, %s2414_s7 }
  0x4a   :  { %p2137_p6 = pnand %p2135_p5, %p2132_p4 }
  0x4c   :  { %2140 = shalt.err (!%p2137_p6)
}
  0x4d   :  { %s2141_s19 = scalar_lea.vmem %s79_s30, 2048  ;;  %p2146_p8 = scmp.lt.s32.totalorder %s79_s30, %s79_s30 }
  0x4e   :  { %p2142_p7 = scmp.ne.s32.totalorder %s79_s30, %s2141_s19  ;;  %p2147_p9 = scmp.lt.s32.totalorder %s2141_s19, %s2141_s19 }
  0x50   :  { %p2148_p10 = por %p2147_p9, %p2146_p8 }
  0x52   :  { %p2149_p11 = pnand %p2148_p10, %p2142_p7 }
  0x54   :  { %2152 = shalt.err (!%p2149_p11)
}
  0x55   :  { %s2216_s3 = smov 64   ;;  %s2217_s13 = smov 4  }
  0x56   :  { %84 = dma.hbm_to_vmem [thread:$0]  %s2414_s7, 2048, %s79_s30, [#allocation9], %s2216_s3, %s2216_s3, %s2217_s13  }
  0x57   :  { %s2218_s22 = smov [#allocation11]   ;;  %s2153_s24 = scalar_lea.hbm %s2416_s9, 1024 }
  0x58   :  { %s92_s23 = sshll.u32 %s2218_s22, 4  ;;  %p2154_p12 = scmp.ne.s32.totalorder %s2416_s9, %s2153_s24  ;;  %s93_s23 = int_to_ptr.vmem [resolvable:$true] %s92_s23 }
  0x59   :  { %p2157_p13 = scmp.lt.u32.totalorder %s2153_s24, %s2416_s9 }
  0x5b   :  { %p2159_p0 = pnand %p2157_p13, %p2154_p12 }
  0x5d   :  { %2162 = shalt.err (!%p2159_p0)
}
  0x5e   :  { %s2163_s29 = scalar_lea.vmem %s93_s23, 1024  ;;  %p2168_p2 = scmp.lt.s32.totalorder %s93_s23, %s93_s23 }
  0x5f   :  { %p2164_p1 = scmp.ne.s32.totalorder %s93_s23, %s2163_s29  ;;  %p2169_p3 = scmp.lt.s32.totalorder %s2163_s29, %s2163_s29 }
  0x61   :  { %p2170_p4 = por %p2169_p3, %p2168_p2 }
  0x63   :  { %p2171_p5 = pnand %p2170_p4, %p2164_p1 }
  0x65   :  { %2174 = shalt.err (!%p2171_p5)
}
  0x66   :  { %98 = dma.hbm_to_vmem [thread:$0]  %s2416_s9, 1024, %s93_s23, [#allocation12], %s2216_s3, %s2216_s3, %s2217_s13  }
  0x67   :  { %2197 = dma.done.wait [#allocation3], 128  }
  0x68   :  { %2198 = vsyncadd [#allocation3], 4294967168 }
  0x69   :  { %2199 = dma.done.wait [#allocation6], 10240  }
  0x6a   :  { %2200 = vsyncadd [#allocation6], 4294957056 }
  0x6b   :  { %2201 = dma.done.wait [#allocation9], 10240  }
  0x6c   :  { %2202 = vsyncadd [#allocation9], 4294957056 }
  0x6d   :  { %2203 = dma.done.wait [#allocation12], 1024  }
  0x6e   :  { %2204 = vsyncadd [#allocation12], 4294966272  ;;  %v2219_v0 = vmov 0   ;;  %v1803_v1 = vld [vmem:[#allocation5 + $0x4] ss:$8 sps:$4 sm:$0xff]   ;;  %v120_v26 = vld [vmem:[#allocation2] sm:$0xff] }
  0x6f   :  { %262 = vmatprep.mubr.bf16.mxu0 %v2219_v0  ;;  %v1805_v2 = vld [vmem:[#allocation5] ss:$8 sps:$4 sm:$0xff]   ;;  %230 = vmatprep.subr.bf16.mxu0 %v1803_v1  ;;  %v1806_v3 = vld [vmem:[#allocation5 + $0x14] ss:$8 sps:$4 sm:$0xff]   ;;  %v1808_v4 = vld [vmem:[#allocation5 + $0x10] ss:$8 sps:$4 sm:$0xff]   ;;  %v121_v30 = vpack.c.bf16 %v120_v26, %v120_v26 }
  0x70   :  { %231 = vmatpush1.bf16.msra.mxu0 %v1805_v2  ;;  %v1809_v5 = vld [vmem:[#allocation5 + $0x24] ss:$8 sps:$4 sm:$0xff]   ;;  %v1811_v6 = vld [vmem:[#allocation5 + $0x20] ss:$8 sps:$4 sm:$0xff]   ;;  %v1812_v7 = vld [vmem:[#allocation5 + $0x34] ss:$8 sps:$4 sm:$0xff]  }
  0x71   :  { %232 = vmatprep.subr.bf16.mxu0 %v1806_v3  ;;  %v1814_v8 = vld [vmem:[#allocation5 + $0x30] ss:$8 sps:$4 sm:$0xff]   ;;  %v1827_v9 = vld [vmem:[#allocation7 + $0x4] ss:$16 sps:$4 sm:$0xff]   ;;  %v1817_v13 = vld [vmem:[#allocation5 + $0x40] ss:$8 sps:$4 sm:$0xff]  }
  0x72   :  { %v1815_v10 = vld [vmem:[#allocation5 + $0x44] ss:$8 sps:$4 sm:$0xff]   ;;  %681 = vmatprep.subr.bf16.mxu1 %v1827_v9  ;;  %v1832_v11 = vld [vmem:[#allocation7] ss:$16 sps:$4 sm:$0xff]   ;;  %v1818_v14 = vld [vmem:[#allocation5 + $0x54] ss:$8 sps:$4 sm:$0xff]  }
  0x73   :  { %v1833_v12 = vld [vmem:[#allocation7 + $0x24] ss:$16 sps:$4 sm:$0xff]   ;;  %682 = vmatpush1.bf16.msra.mxu1 %v1832_v11  ;;  %v1838_v15 = vld [vmem:[#allocation7 + $0x20] ss:$16 sps:$4 sm:$0xff]   ;;  %v1831_v27 = vld [vmem:[#allocation7 + $0xc] ss:$16 sps:$4 sm:$0xff]  }
  0x74   :  { %233 = vmatpush1.bf16.msra.mxu0 %v1808_v4  ;;  %683 = vmatprep.subr.bf16.mxu1 %v1833_v12  ;;  %v1839_v16 = vld [vmem:[#allocation7 + $0x44] ss:$16 sps:$4 sm:$0xff]   ;;  %v1820_v17 = vld [vmem:[#allocation5 + $0x50] ss:$8 sps:$4 sm:$0xff]   ;;  %v1823_v21 = vld [vmem:[#allocation5 + $0x60] ss:$8 sps:$4 sm:$0xff]  }
  0x75   :  { %234 = vmatprep.subr.bf16.mxu0 %v1809_v5  ;;  %v1821_v18 = vld [vmem:[#allocation5 + $0x64] ss:$8 sps:$4 sm:$0xff]   ;;  %v1844_v19 = vld [vmem:[#allocation7 + $0x40] ss:$16 sps:$4 sm:$0xff]   ;;  %v1824_v22 = vld [vmem:[#allocation5 + $0x74] ss:$8 sps:$4 sm:$0xff]  }
  0x76   :  { %v1845_v20 = vld [vmem:[#allocation7 + $0x64] ss:$16 sps:$4 sm:$0xff]   ;;  %v1850_v23 = vld [vmem:[#allocation7 + $0x60] ss:$16 sps:$4 sm:$0xff]   ;;  %v1829_v31 = vld [vmem:[#allocation7 + $0x8] ss:$16 sps:$4 sm:$0xff]  }
  0x77   :  { %684 = vmatpush1.bf16.msra.mxu1 %v1838_v15  ;;  %v1851_v24 = vld [vmem:[#allocation7 + $0x84] ss:$16 sps:$4 sm:$0xff]   ;;  %v1826_v25 = vld [vmem:[#allocation5 + $0x70] ss:$8 sps:$4 sm:$0xff]   ;;  %v1837_v32 = vld [vmem:[#allocation7 + $0x2c] ss:$16 sps:$4 sm:$0xff]  }
  0x78   :  { %235 = vmatpush1.bf16.msra.mxu0 %v1811_v6  ;;  %685 = vmatprep.subr.bf16.mxu1 %v1839_v16  ;;  %v1856_v28 = vld [vmem:[#allocation7 + $0x80] ss:$16 sps:$4 sm:$0xff]   ;;  %v1857_v29 = vld [vmem:[#allocation7 + $0xa4] ss:$16 sps:$4 sm:$0xff]   ;;  %v1835_v35 = vld [vmem:[#allocation7 + $0x28] ss:$16 sps:$4 sm:$0xff]  }
  0x79   :  { %236 = vmatprep.subr.bf16.mxu0 %v1812_v7  ;;  %v1862_v33 = vld [vmem:[#allocation7 + $0xa0] ss:$16 sps:$4 sm:$0xff]   ;;  %v1863_v34 = vld [vmem:[#allocation7 + $0xc4] ss:$16 sps:$4 sm:$0xff]   ;;  %v1843_v36 = vld [vmem:[#allocation7 + $0x4c] ss:$16 sps:$4 sm:$0xff]  }
  0x7a   :  { %v1868_v37 = vld [vmem:[#allocation7 + $0xc0] ss:$16 sps:$4 sm:$0xff]   ;;  %v1869_v38 = vld [vmem:[#allocation7 + $0xe4] ss:$16 sps:$4 sm:$0xff]   ;;  %v1841_v39 = vld [vmem:[#allocation7 + $0x48] ss:$16 sps:$4 sm:$0xff]  }
  0x7b   :  { %686 = vmatpush1.bf16.msra.mxu1 %v1844_v19  ;;  %v1849_v40 = vld [vmem:[#allocation7 + $0x6c] ss:$16 sps:$4 sm:$0xff]   ;;  %v1874_v41 = vld [vmem:[#allocation7 + $0xe0] ss:$16 sps:$4 sm:$0xff]   ;;  %v1875_v42 = vld [vmem:[#allocation7 + $0x104] ss:$16 sps:$4 sm:$0xff]  }
  0x7c   :  { %237 = vmatpush1.bf16.msra.mxu0 %v1814_v8  ;;  %687 = vmatprep.subr.bf16.mxu1 %v1845_v20  ;;  %v1847_v43 = vld [vmem:[#allocation7 + $0x68] ss:$16 sps:$4 sm:$0xff]   ;;  %v1855_v44 = vld [vmem:[#allocation7 + $0x8c] ss:$16 sps:$4 sm:$0xff]   ;;  %v1880_v45 = vld [vmem:[#allocation7 + $0x100] ss:$16 sps:$4 sm:$0xff]   ;;  %v140_v20 = vlaneseq }
  0x7d   :  { %238 = vmatprep.subr.bf16.mxu0 %v1815_v10  ;;  %v1881_v46 = vld [vmem:[#allocation7 + $0x124] ss:$16 sps:$4 sm:$0xff]   ;;  %v1853_v47 = vld [vmem:[#allocation7 + $0x88] ss:$16 sps:$4 sm:$0xff]   ;;  %v1886_v48 = vld [vmem:[#allocation7 + $0x120] ss:$16 sps:$4 sm:$0xff]  }
  0x7e   :  { %v1861_v49 = vld [vmem:[#allocation7 + $0xac] ss:$16 sps:$4 sm:$0xff]   ;;  %v1887_v50 = vld [vmem:[#allocation7 + $0x144] ss:$16 sps:$4 sm:$0xff]   ;;  %v1859_v51 = vld [vmem:[#allocation7 + $0xa8] ss:$16 sps:$4 sm:$0xff]  }
  0x7f   :  { %688 = vmatpush1.bf16.msra.mxu1 %v1850_v23  ;;  %v1892_v52 = vld [vmem:[#allocation7 + $0x140] ss:$16 sps:$4 sm:$0xff]   ;;  %v1867_v53 = vld [vmem:[#allocation7 + $0xcc] ss:$16 sps:$4 sm:$0xff]   ;;  %v1893_v54 = vld [vmem:[#allocation7 + $0x164] ss:$16 sps:$4 sm:$0xff]  }
  0x80   :  { %239 = vmatpush1.bf16.msra.mxu0 %v1817_v13  ;;  %689 = vmatprep.subr.bf16.mxu1 %v1851_v24  ;;  %v1865_v55 = vld [vmem:[#allocation7 + $0xc8] ss:$16 sps:$4 sm:$0xff]   ;;  %v1898_v56 = vld [vmem:[#allocation7 + $0x160] ss:$16 sps:$4 sm:$0xff]   ;;  %v1873_v57 = vld [vmem:[#allocation7 + $0xec] ss:$16 sps:$4 sm:$0xff]  }
  0x81   :  { %240 = vmatprep.subr.bf16.mxu0 %v1818_v14  ;;  %v1899_v58 = vld [vmem:[#allocation7 + $0x184] ss:$16 sps:$4 sm:$0xff]   ;;  %v1871_v59 = vld [vmem:[#allocation7 + $0xe8] ss:$16 sps:$4 sm:$0xff]   ;;  %v1904_v60 = vld [vmem:[#allocation7 + $0x180] ss:$16 sps:$4 sm:$0xff]  }
  0x82   :  { %v1879_v61 = vld [vmem:[#allocation7 + $0x10c] ss:$16 sps:$4 sm:$0xff]   ;;  %v1905_v62 = vld [vmem:[#allocation7 + $0x1a4] ss:$16 sps:$4 sm:$0xff]   ;;  %v1877_v63 = vld [vmem:[#allocation7 + $0x108] ss:$16 sps:$4 sm:$0xff]  }
  0x83   :  { %690 = vmatpush1.bf16.msra.mxu1 %v1856_v28  ;;  %v1910_v0 = vld [vmem:[#allocation7 + $0x1a0] ss:$16 sps:$4 sm:$0xff]   ;;  %v1885_v1 = vld [vmem:[#allocation7 + $0x12c] ss:$16 sps:$4 sm:$0xff]   ;;  %v1883_v2 = vld [vmem:[#allocation7 + $0x128] ss:$16 sps:$4 sm:$0xff]  }
  0x84   :  { %241 = vmatpush1.bf16.msra.mxu0 %v1820_v17  ;;  %691 = vmatprep.subr.bf16.mxu1 %v1857_v29  ;;  %v1891_v3 = vld [vmem:[#allocation7 + $0x14c] ss:$16 sps:$4 sm:$0xff]   ;;  %v1889_v4 = vld [vmem:[#allocation7 + $0x148] ss:$16 sps:$4 sm:$0xff]   ;;  %v1911_v11 = vld [vmem:[#allocation7 + $0x1c4] ss:$16 sps:$4 sm:$0xff]  }
  0x85   :  { %242 = vmatprep.subr.bf16.mxu0 %v1821_v18  ;;  %v1897_v5 = vld [vmem:[#allocation7 + $0x16c] ss:$16 sps:$4 sm:$0xff]   ;;  %v1895_v6 = vld [vmem:[#allocation7 + $0x168] ss:$16 sps:$4 sm:$0xff]   ;;  %v1916_v14 = vld [vmem:[#allocation7 + $0x1c0] ss:$16 sps:$4 sm:$0xff]  }
  0x86   :  { %v1903_v7 = vld [vmem:[#allocation7 + $0x18c] ss:$16 sps:$4 sm:$0xff]   ;;  %v1901_v8 = vld [vmem:[#allocation7 + $0x188] ss:$16 sps:$4 sm:$0xff]   ;;  %v1917_v15 = vld [vmem:[#allocation7 + $0x1e4] ss:$16 sps:$4 sm:$0xff]  }
  0x87   :  { %692 = vmatpush1.bf16.msra.mxu1 %v1862_v33  ;;  %v1909_v9 = vld [vmem:[#allocation7 + $0x1ac] ss:$16 sps:$4 sm:$0xff]   ;;  %v1907_v10 = vld [vmem:[#allocation7 + $0x1a8] ss:$16 sps:$4 sm:$0xff]   ;;  %v1922_v18 = vld [vmem:[#allocation7 + $0x1e0] ss:$16 sps:$4 sm:$0xff]  }
  0x88   :  { %243 = vmatpush1.bf16.msra.mxu0 %v1823_v21  ;;  %693 = vmatprep.subr.bf16.mxu1 %v1863_v34  ;;  %v1915_v12 = vld [vmem:[#allocation7 + $0x1cc] ss:$16 sps:$4 sm:$0xff]   ;;  %v1913_v13 = vld [vmem:[#allocation7 + $0x1c8] ss:$16 sps:$4 sm:$0xff]   ;;  %v2355_v21 = vshrl.u32 %v140_v20, 7  ;;  %vm2221_vm0 = vmmov 0  }
  0x89   :  { %244 = vmatprep.subr.bf16.mxu0 %v1824_v22  ;;  %v1921_v16 = vld [vmem:[#allocation7 + $0x1ec] ss:$16 sps:$4 sm:$0xff]   ;;  %v1919_v17 = vld [vmem:[#allocation7 + $0x1e8] ss:$16 sps:$4 sm:$0xff]   ;;  %s2222_s28 = smov [#allocation13]  }
  0x8a   :  { %v1925_v19 = vld [vmem:[#allocation8 + $0x4] ss:$8 sps:$4 sm:$0xff]   ;;  %v2358_v22 = vsub.s32 0, %v2355_v21  ;;  %v138_v23 = vld [vmem:[%s2409_s2] sm:$0x3]  ;;  %v2364_v24 = vsub.s32 1, %v2355_v21 }
  0x8b   :  { %694 = vmatpush1.bf16.msra.mxu1 %v1868_v37  ;;  %s1548_s19 = sshll.u32 %s2222_s28, 4  ;;  %s1549_s19 = int_to_ptr.vmem [resolvable:$true] %s1548_s19 }
  0x8c   :  { %245 = vmatpush1.bf16.msra.mxu0 %v1826_v25  ;;  %695 = vmatprep.subr.bf16.mxu1 %v1869_v38  ;;  %v143_v25 = vrot.slane %v138_v23, %v2358_v22  ;;  %v147_v26 = vrot.slane %v138_v23, %v2364_v24  ;;  %v1928_v38 = vld [vmem:[#allocation8 + $0x14] ss:$8 sps:$4 sm:$0xff]   ;;  %p2180_p7 = scmp.lt.s32.totalorder %s1549_s19, %s1549_s19 }
  0x8d   :  { %722 = vmatprep.subr.bf16.mxu0 %v1831_v27 }
  0x8f   :  { %263 = vmatmul.mubr.bf16.vlgmr.msra.gmra.mrb[0].mxu0 %v121_v30  ;;  %696 = vmatpush1.bf16.msra.mxu1 %v1874_v41  ;;  %v1929_v41 = vld [vmem:[#allocation8 + $0x20] ss:$8 sps:$4 sm:$0xff]  }
  0x90   :  { %723 = vmatpush1.bf16.msra.mxu0 %v1829_v31  ;;  %697 = vmatprep.subr.bf16.mxu1 %v1875_v42  ;;  %v1934_v42 = vld [vmem:[#allocation8 + $0x34] ss:$8 sps:$4 sm:$0xff]  }
  0x91   :  { %724 = vmatprep.subr.bf16.mxu0 %v1837_v32 }
  0x93   :  { %698 = vmatpush1.bf16.msra.mxu1 %v1880_v45  ;;  %v1935_v45 = vld [vmem:[#allocation8 + $0x40] ss:$8 sps:$4 sm:$0xff]  }
  0x94   :  { %725 = vmatpush1.bf16.msra.mxu0 %v1835_v35  ;;  %699 = vmatprep.subr.bf16.mxu1 %v1881_v46  ;;  %v1940_v46 = vld [vmem:[#allocation8 + $0x54] ss:$8 sps:$4 sm:$0xff]  }
  0x95   :  { %726 = vmatprep.subr.bf16.mxu0 %v1843_v36  ;;  %v1923_v36 = vld [vmem:[#allocation8] ss:$8 sps:$4 sm:$0xff]  }
  0x97   :  { %700 = vmatpush1.bf16.msra.mxu1 %v1886_v48  ;;  %v1943_v48 = vld [vmem:[#allocation8 + $0x64] ss:$8 sps:$4 sm:$0xff]  }
  0x98   :  { %727 = vmatpush1.bf16.msra.mxu0 %v1841_v39  ;;  %701 = vmatprep.subr.bf16.mxu1 %v1887_v50  ;;  %v1926_v39 = vld [vmem:[#allocation8 + $0x10] ss:$8 sps:$4 sm:$0xff]   ;;  %v1946_v50 = vld [vmem:[#allocation8 + $0x74] ss:$8 sps:$4 sm:$0xff]  }
  0x99   :  { %728 = vmatprep.subr.bf16.mxu0 %v1849_v40  ;;  %v1931_v40 = vld [vmem:[#allocation8 + $0x24] ss:$8 sps:$4 sm:$0xff]  }
  0x9b   :  { %702 = vmatpush1.bf16.msra.mxu1 %v1892_v52  ;;  %v1949_v52 = vld [vmem:[#allocation8 + $0x84] ss:$8 sps:$4 sm:$0xff]  }
  0x9c   :  { %729 = vmatpush1.bf16.msra.mxu0 %v1847_v43  ;;  %703 = vmatprep.subr.bf16.mxu1 %v1893_v54  ;;  %v1932_v43 = vld [vmem:[#allocation8 + $0x30] ss:$8 sps:$4 sm:$0xff]   ;;  %v1952_v54 = vld [vmem:[#allocation8 + $0x94] ss:$8 sps:$4 sm:$0xff]  }
  0x9d   :  { %730 = vmatprep.subr.bf16.mxu0 %v1855_v44  ;;  %v1937_v44 = vld [vmem:[#allocation8 + $0x44] ss:$8 sps:$4 sm:$0xff]  }
  0x9f   :  { %704 = vmatpush1.bf16.msra.mxu1 %v1898_v56  ;;  %v1955_v56 = vld [vmem:[#allocation8 + $0xa4] ss:$8 sps:$4 sm:$0xff]  }
  0xa0   :  { %731 = vmatpush1.bf16.msra.mxu0 %v1853_v47  ;;  %705 = vmatprep.subr.bf16.mxu1 %v1899_v58  ;;  %v1938_v47 = vld [vmem:[#allocation8 + $0x50] ss:$8 sps:$4 sm:$0xff]   ;;  %v1958_v58 = vld [vmem:[#allocation8 + $0xb4] ss:$8 sps:$4 sm:$0xff]  }
  0xa1   :  { %732 = vmatprep.subr.bf16.mxu0 %v1861_v49  ;;  %v1941_v49 = vld [vmem:[#allocation8 + $0x60] ss:$8 sps:$4 sm:$0xff]  }
  0xa3   :  { %706 = vmatpush1.bf16.msra.mxu1 %v1904_v60  ;;  %v1961_v60 = vld [vmem:[#allocation8 + $0xc4] ss:$8 sps:$4 sm:$0xff]  }
  0xa4   :  { %733 = vmatpush1.bf16.msra.mxu0 %v1859_v51  ;;  %707 = vmatprep.subr.bf16.mxu1 %v1905_v62  ;;  %v1944_v51 = vld [vmem:[#allocation8 + $0x70] ss:$8 sps:$4 sm:$0xff]   ;;  %v1964_v62 = vld [vmem:[#allocation8 + $0xd4] ss:$8 sps:$4 sm:$0xff]  }
  0xa5   :  { %734 = vmatprep.subr.bf16.mxu0 %v1867_v53  ;;  %v1947_v53 = vld [vmem:[#allocation8 + $0x80] ss:$8 sps:$4 sm:$0xff]  }
  0xa7   :  { %708 = vmatpush1.bf16.msra.mxu1 %v1910_v0  ;;  %v1967_v0 = vld [vmem:[#allocation8 + $0xe4] ss:$8 sps:$4 sm:$0xff]  }
  0xa8   :  { %735 = vmatpush1.bf16.msra.mxu0 %v1865_v55  ;;  %709 = vmatprep.subr.bf16.mxu1 %v1911_v11  ;;  %v1950_v55 = vld [vmem:[#allocation8 + $0x90] ss:$8 sps:$4 sm:$0xff]  }
  0xa9   :  { %736 = vmatprep.subr.bf16.mxu0 %v1873_v57  ;;  %v1953_v57 = vld [vmem:[#allocation8 + $0xa0] ss:$8 sps:$4 sm:$0xff]   ;;  %v2025_v11 = vld [vmem:[#allocation10 + $0x58] sm:$0xff]  }
  0xab   :  { %710 = vmatpush1.bf16.msra.mxu1 %v1916_v14  ;;  %v2028_v14 = vld [vmem:[#allocation10 + $0x20] sm:$0xff]  }
  0xac   :  { %737 = vmatpush1.bf16.msra.mxu0 %v1871_v59  ;;  %711 = vmatprep.subr.bf16.mxu1 %v1917_v15  ;;  %v1956_v59 = vld [vmem:[#allocation8 + $0xb0] ss:$8 sps:$4 sm:$0xff]   ;;  %v2029_v15 = vld [vmem:[#allocation10 + $0x68] sm:$0xff]  }
  0xad   :  { %738 = vmatprep.subr.bf16.mxu0 %v1879_v61  ;;  %v1959_v61 = vld [vmem:[#allocation8 + $0xc0] ss:$8 sps:$4 sm:$0xff]  }
  0xaf   :  { %712 = vmatpush1.bf16.msra.mxu1 %v1922_v18  ;;  %v355_v18 = vsub.s32 3, %v2355_v21 }
  0xb0   :  { %739 = vmatpush1.bf16.msra.mxu0 %v1877_v63  ;;  %1167 = vmatprep.subr.bf16.mxu1 %v1925_v19  ;;  %v1962_v63 = vld [vmem:[#allocation8 + $0xd0] ss:$8 sps:$4 sm:$0xff]  }
  0xb1   :  { %740 = vmatprep.subr.bf16.mxu0 %v1885_v1  ;;  %v1965_v1 = vld [vmem:[#allocation8 + $0xe0] ss:$8 sps:$4 sm:$0xff]  }
  0xb4   :  { %741 = vmatpush1.bf16.msra.mxu0 %v1883_v2  ;;  %v1970_v2 = vld [vmem:[#allocation8 + $0xf4] ss:$8 sps:$4 sm:$0xff]  }
  0xb5   :  { %742 = vmatprep.subr.bf16.mxu0 %v1891_v3  ;;  %v1968_v3 = vld [vmem:[#allocation8 + $0xf0] ss:$8 sps:$4 sm:$0xff]  }
  0xb8   :  { %743 = vmatpush1.bf16.msra.mxu0 %v1889_v4  ;;  %v1973_v4 = vld [vmem:[#allocation8 + $0x104] ss:$8 sps:$4 sm:$0xff]  }
  0xb9   :  { %744 = vmatprep.subr.bf16.mxu0 %v1897_v5  ;;  %v2019_v5 = vld [vmem:[#allocation10 + $0x40] sm:$0xff]  }
  0xbc   :  { %745 = vmatpush1.bf16.msra.mxu0 %v1895_v6  ;;  %v2020_v6 = vld [vmem:[#allocation10] sm:$0xff]  }
  0xbd   :  { %746 = vmatprep.subr.bf16.mxu0 %v1903_v7  ;;  %v2021_v7 = vld [vmem:[#allocation10 + $0x48] sm:$0xff]  }
  0xc0   :  { %747 = vmatpush1.bf16.msra.mxu0 %v1901_v8  ;;  %v2022_v8 = vld [vmem:[#allocation10 + $0x8] sm:$0xff]  }
  0xc1   :  { %748 = vmatprep.subr.bf16.mxu0 %v1909_v9  ;;  %v2023_v9 = vld [vmem:[#allocation10 + $0x50] sm:$0xff]  }
  0xc4   :  { %749 = vmatpush1.bf16.msra.mxu0 %v1907_v10  ;;  %v2024_v10 = vld [vmem:[#allocation10 + $0x10] sm:$0xff]  }
  0xc5   :  { %750 = vmatprep.subr.bf16.mxu0 %v1915_v12  ;;  %v2026_v12 = vld [vmem:[#allocation10 + $0x18] sm:$0xff]  }
  0xc8   :  { %751 = vmatpush1.bf16.msra.mxu0 %v1913_v13  ;;  %v2027_v13 = vld [vmem:[#allocation10 + $0x60] sm:$0xff]  }
  0xc9   :  { %752 = vmatprep.subr.bf16.mxu0 %v1921_v16  ;;  %v2030_v16 = vld [vmem:[#allocation10 + $0x28] sm:$0xff]  }
  0xcc   :  { %753 = vmatpush1.bf16.msra.mxu0 %v1919_v17  ;;  %v2371_v17 = vld [vmem:[%s2411_s4] sm:$0xf] }
  0xcd   :  { %1730 = vmatprep.subr.bf16.mxu0 %v2019_v5  ;;  %v344_v19 = vrot.slane %v2371_v17, %v2358_v22  ;;  %v348_v20 = vrot.slane %v2371_v17, %v2364_v24  ;;  %v356_v23 = vrot.slane %v2371_v17, %v355_v18  ;;  %v2010_v5 = vld [vmem:[#allocation8 + $0x1d0] ss:$8 sps:$4 sm:$0xff]  }
  0xce   :  { %v835_v18 = vld [vmem:[%s2413_s6] sm:$0x3] }
 0x162   :  { %v264_v27 = vpop.f32.mrb[0].mxu0 }
 0x163   :  { %v265_v28 = vadd.f32 %v264_v27, %v143_v25  ;;  %v266_v29 = vpop.f32.mrb[1].mxu0 }
 0x164   :  { %v267_v30 = vadd.f32 %v266_v29, %v147_v26  ;;  %v268_v31 = vpop.f32.mrb[2].mxu0 }
 0x165   :  { %v271_v32 = vmax.f32 %v265_v28, 0.0  ;;  %v269_v33 = vpop.f32.mrb[3].mxu0 }
 0x166   :  { %v272_v34 = vmax.f32 %v267_v30, 0.0 }
 0x167   :  { %v273_v37 = vpack.c.bf16 %v271_v32, %v271_v32 }
 0x168   :  { %v274_v35 = vpack.c.bf16 %v272_v34, %v272_v34 }
 0x16a   :  { %713 = vmatprep.mubr.bf16.mxu1 %v274_v35  ;;  %754 = vmatprep.mubr.bf16.mxu0 %v274_v35 }
 0x16b   :  { %714 = vmatmul.mubr.bf16.vlgmr.msra.gmra.mrb[0].mxu1 %v273_v37  ;;  %755 = vmatmul.mubr.bf16.vlgmr.msra.gmra.mrb[4].mxu0 %v273_v37 }
 0x16c   :  { %1168 = vmatpush1.bf16.msra.mxu1 %v1923_v36  ;;  %1731 = vmatpush3.bf16.msra.mxu0 %v2020_v6 }
 0x16d   :  { %1169 = vmatprep.subr.bf16.mxu1 %v1928_v38  ;;  %1732 = vmatprep.subr.bf16.mxu0 %v2021_v7  ;;  %v2015_v7 = vld [vmem:[#allocation8 + $0x1e4] ss:$8 sps:$4 sm:$0xff]  }
 0x170   :  { %1170 = vmatpush1.bf16.msra.mxu1 %v1926_v39  ;;  %1733 = vmatpush3.bf16.msra.mxu0 %v2022_v8  ;;  %v2013_v8 = vld [vmem:[#allocation8 + $0x1e0] ss:$8 sps:$4 sm:$0xff]  }
 0x171   :  { %1171 = vmatprep.subr.bf16.mxu1 %v1931_v40  ;;  %1734 = vmatprep.subr.bf16.mxu0 %v2023_v9  ;;  %v1971_v40 = vld [vmem:[#allocation8 + $0x100] ss:$8 sps:$4 sm:$0xff]  }
 0x174   :  { %1172 = vmatpush1.bf16.msra.mxu1 %v1929_v41  ;;  %1735 = vmatpush3.bf16.msra.mxu0 %v2024_v10  ;;  %v2018_v10 = vld [vmem:[#allocation8 + $0x1f4] ss:$8 sps:$4 sm:$0xff]  }
 0x175   :  { %1173 = vmatprep.subr.bf16.mxu1 %v1934_v42  ;;  %1736 = vmatprep.subr.bf16.mxu0 %v2025_v11  ;;  %v1976_v42 = vld [vmem:[#allocation8 + $0x114] ss:$8 sps:$4 sm:$0xff]   ;;  %v2016_v11 = vld [vmem:[#allocation8 + $0x1f0] ss:$8 sps:$4 sm:$0xff]  }
 0x178   :  { %1174 = vmatpush1.bf16.msra.mxu1 %v1932_v43  ;;  %1737 = vmatpush3.bf16.msra.mxu0 %v2026_v12 }
 0x179   :  { %1175 = vmatprep.subr.bf16.mxu1 %v1937_v44  ;;  %1738 = vmatprep.subr.bf16.mxu0 %v2027_v13  ;;  %v1974_v44 = vld [vmem:[#allocation8 + $0x110] ss:$8 sps:$4 sm:$0xff]  }
 0x17a   :  { %v2031_v13 = vld [vmem:[#allocation10 + $0x70] sm:$0xff]  }
 0x17c   :  { %1176 = vmatpush1.bf16.msra.mxu1 %v1935_v45  ;;  %1739 = vmatpush3.bf16.msra.mxu0 %v2028_v14  ;;  %v1979_v45 = vld [vmem:[#allocation8 + $0x124] ss:$8 sps:$4 sm:$0xff]   ;;  %v2032_v14 = vld [vmem:[#allocation10 + $0x30] sm:$0xff]  }
 0x17d   :  { %1177 = vmatprep.subr.bf16.mxu1 %v1940_v46  ;;  %1740 = vmatprep.subr.bf16.mxu0 %v2029_v15  ;;  %v1977_v46 = vld [vmem:[#allocation8 + $0x120] ss:$8 sps:$4 sm:$0xff]   ;;  %v2033_v15 = vld [vmem:[#allocation10 + $0x78] sm:$0xff]  }
 0x180   :  { %1178 = vmatpush1.bf16.msra.mxu1 %v1938_v47  ;;  %1741 = vmatpush3.bf16.msra.mxu0 %v2030_v16  ;;  %v1982_v47 = vld [vmem:[#allocation8 + $0x134] ss:$8 sps:$4 sm:$0xff]  }
 0x181   :  { %1179 = vmatprep.subr.bf16.mxu1 %v1943_v48  ;;  %v1980_v48 = vld [vmem:[#allocation8 + $0x130] ss:$8 sps:$4 sm:$0xff]   ;;  %1742 = vmatprep.subr.bf16.mxu0 %v2031_v13 }
 0x182   :  { %v2034_v16 = vld [vmem:[#allocation10 + $0x38] sm:$0xff]  }
 0x184   :  { %1180 = vmatpush1.bf16.msra.mxu1 %v1941_v49  ;;  %v1985_v49 = vld [vmem:[#allocation8 + $0x144] ss:$8 sps:$4 sm:$0xff]   ;;  %1743 = vmatpush3.bf16.msra.mxu0 %v2032_v14 }
 0x185   :  { %1181 = vmatprep.subr.bf16.mxu1 %v1946_v50  ;;  %v1983_v50 = vld [vmem:[#allocation8 + $0x140] ss:$8 sps:$4 sm:$0xff]   ;;  %1744 = vmatprep.subr.bf16.mxu0 %v2033_v15 }
 0x188   :  { %1182 = vmatpush1.bf16.msra.mxu1 %v1944_v51  ;;  %v1988_v51 = vld [vmem:[#allocation8 + $0x154] ss:$8 sps:$4 sm:$0xff]   ;;  %1745 = vmatpush3.bf16.msra.mxu0 %v2034_v16 }
 0x189   :  { %1183 = vmatprep.subr.bf16.mxu1 %v1949_v52  ;;  %v1986_v52 = vld [vmem:[#allocation8 + $0x150] ss:$8 sps:$4 sm:$0xff]  }
 0x18c   :  { %1184 = vmatpush1.bf16.msra.mxu1 %v1947_v53  ;;  %v1991_v53 = vld [vmem:[#allocation8 + $0x164] ss:$8 sps:$4 sm:$0xff]  }
 0x18d   :  { %1185 = vmatprep.subr.bf16.mxu1 %v1952_v54  ;;  %v1989_v54 = vld [vmem:[#allocation8 + $0x160] ss:$8 sps:$4 sm:$0xff]  }
 0x190   :  { %1186 = vmatpush1.bf16.msra.mxu1 %v1950_v55  ;;  %v1994_v55 = vld [vmem:[#allocation8 + $0x174] ss:$8 sps:$4 sm:$0xff]  }
 0x191   :  { %1187 = vmatprep.subr.bf16.mxu1 %v1955_v56  ;;  %v1992_v56 = vld [vmem:[#allocation8 + $0x170] ss:$8 sps:$4 sm:$0xff]  }
 0x194   :  { %1188 = vmatpush1.bf16.msra.mxu1 %v1953_v57  ;;  %v1997_v57 = vld [vmem:[#allocation8 + $0x184] ss:$8 sps:$4 sm:$0xff]  }
 0x195   :  { %1189 = vmatprep.subr.bf16.mxu1 %v1958_v58  ;;  %v1995_v58 = vld [vmem:[#allocation8 + $0x180] ss:$8 sps:$4 sm:$0xff]  }
 0x198   :  { %1190 = vmatpush1.bf16.msra.mxu1 %v1956_v59  ;;  %v2000_v59 = vld [vmem:[#allocation8 + $0x194] ss:$8 sps:$4 sm:$0xff]  }
 0x199   :  { %1191 = vmatprep.subr.bf16.mxu1 %v1961_v60  ;;  %v1998_v60 = vld [vmem:[#allocation8 + $0x190] ss:$8 sps:$4 sm:$0xff]  }
 0x19c   :  { %1192 = vmatpush1.bf16.msra.mxu1 %v1959_v61  ;;  %v2003_v61 = vld [vmem:[#allocation8 + $0x1a4] ss:$8 sps:$4 sm:$0xff]  }
 0x19d   :  { %1193 = vmatprep.subr.bf16.mxu1 %v1964_v62  ;;  %v2001_v62 = vld [vmem:[#allocation8 + $0x1a0] ss:$8 sps:$4 sm:$0xff]  }
 0x1a0   :  { %1194 = vmatpush1.bf16.msra.mxu1 %v1962_v63  ;;  %v2006_v63 = vld [vmem:[#allocation8 + $0x1b4] ss:$8 sps:$4 sm:$0xff]  }
 0x1a1   :  { %1195 = vmatprep.subr.bf16.mxu1 %v1967_v0  ;;  %v2004_v0 = vld [vmem:[#allocation8 + $0x1b0] ss:$8 sps:$4 sm:$0xff]  }
 0x1a4   :  { %1196 = vmatpush1.bf16.msra.mxu1 %v1965_v1  ;;  %v2009_v1 = vld [vmem:[#allocation8 + $0x1c4] ss:$8 sps:$4 sm:$0xff]  }
 0x1a5   :  { %1197 = vmatprep.subr.bf16.mxu1 %v1970_v2  ;;  %v2007_v2 = vld [vmem:[#allocation8 + $0x1c0] ss:$8 sps:$4 sm:$0xff]  }
 0x1a8   :  { %1198 = vmatpush1.bf16.msra.mxu1 %v1968_v3  ;;  %v351_v3 = vsub.s32 2, %v2355_v21 }
 0x1a9   :  { %1208 = vmatprep.subr.bf16.mxu1 %v1973_v4  ;;  %v2012_v4 = vld [vmem:[#allocation8 + $0x1d4] ss:$8 sps:$4 sm:$0xff]  }
 0x1aa   :  { %v352_v6 = vrot.slane %v2371_v17, %v351_v3  ;;  %v2220_v17 = vmov 0.0  }
 0x1ab   :  { %1761 = vmatprep.subr.bf16.mxu0 %v2220_v17 }
 0x23e   :  { %v715_v25 = vpop.f32.mrb[0].mxu1  ;;  %v2379_v26 = vpop.f32.mrb[4].mxu0 }
 0x23f   :  { %v716_v27 = vadd.f32 %v715_v25, %v344_v19  ;;  %v717_v28 = vpop.f32.mrb[1].mxu1  ;;  %v758_v29 = vpop.f32.mrb[5].mxu0  ;;  %v757_v9 = vadd.f32 %v2379_v26, %v352_v6  ;;  %v840_v19 = vrot.slane %v835_v18, %v2358_v22  ;;  %v2037_v22 = vld [vmem:[#allocation11 + $0x10] sm:$0xff]  }
 0x240   :  { %v718_v30 = vadd.f32 %v717_v28, %v348_v20  ;;  %v759_v31 = vadd.f32 %v758_v29, %v356_v23  ;;  %v719_v32 = vpop.f32.mrb[2].mxu1  ;;  %v760_v33 = vpop.f32.mrb[6].mxu0  ;;  %v844_v20 = vrot.slane %v835_v18, %v2364_v24  ;;  %v2038_v24 = vld [vmem:[#allocation11 + $0x18] sm:$0xff]  }
 0x241   :  { %v763_v34 = vmax.f32 %v716_v27, 0.0  ;;  %v720_v35 = vpop.f32.mrb[3].mxu1  ;;  %v761_v36 = vpop.f32.mrb[7].mxu0  ;;  %v765_v12 = vmax.f32 %v757_v9, 0.0  ;;  %v2035_v33 = vld [vmem:[#allocation11] sm:$0xff]  }
 0x242   :  { %v764_v37 = vmax.f32 %v718_v30, 0.0  ;;  %v766_v38 = vmax.f32 %v759_v31, 0.0  ;;  %v2036_v35 = vld [vmem:[#allocation11 + $0x8] sm:$0xff]   ;;  %v2039_v36 = vld [vmem:[#allocation11 + $0x20] sm:$0xff]  }
 0x243   :  { %v767_v41 = vpack.c.bf16 %v763_v34, %v763_v34  ;;  %v769_v21 = vpack.c.bf16 %v765_v12, %v765_v12 }
 0x244   :  { %v768_v39 = vpack.c.bf16 %v764_v37, %v764_v37  ;;  %v770_v43 = vpack.c.bf16 %v766_v38, %v766_v38  ;;  %v2040_v37 = vld [vmem:[#allocation11 + $0x28] sm:$0xff]   ;;  %v2041_v38 = vld [vmem:[#allocation11 + $0x30] sm:$0xff]  }
 0x246   :  { %1199 = vmatprep.mubr.bf16.mxu1 %v768_v39  ;;  %v2042_v39 = vld [vmem:[#allocation11 + $0x38] sm:$0xff]  }
 0x247   :  { %1200 = vmatmul.mubr.bf16.vlgmr.msra.gmra.mrb[4].mxu1 %v767_v41  ;;  %v1704_v41 = vld [vmem:[%s2415_s8] ss:$0 sm:$0xff]  ;;  %s2175_s8 = scalar_lea.vmem %s1549_s19, 128 }
 0x248   :  { %1209 = vmatpush1.bf16.msra.mxu1 %v1971_v40  ;;  %1240 = vmatprep.mubr.bf16.mxu1 %v770_v43  ;;  %p2176_p6 = scmp.ne.s32.totalorder %s1549_s19, %s2175_s8  ;;  %p2181_p8 = scmp.lt.s32.totalorder %s2175_s8, %s2175_s8 }
 0x249   :  { %1210 = vmatprep.subr.bf16.mxu1 %v1976_v42 }
 0x24a   :  { %p2182_p9 = por %p2181_p8, %p2180_p7 }
 0x24c   :  { %1211 = vmatpush1.bf16.msra.mxu1 %v1974_v44  ;;  %p2183_p10 = pnand %p2182_p9, %p2176_p6 }
 0x24d   :  { %1212 = vmatprep.subr.bf16.mxu1 %v1979_v45 }
 0x250   :  { %1213 = vmatpush1.bf16.msra.mxu1 %v1977_v46 }
 0x251   :  { %1214 = vmatprep.subr.bf16.mxu1 %v1982_v47 }
 0x254   :  { %1215 = vmatpush1.bf16.msra.mxu1 %v1980_v48 }
 0x255   :  { %1216 = vmatprep.subr.bf16.mxu1 %v1985_v49  ;;  %v1721_v49 = vld [vmem:[%s2417_s10] ss:$0 sm:$0xff] }
 0x258   :  { %1217 = vmatpush1.bf16.msra.mxu1 %v1983_v50 }
 0x259   :  { %1218 = vmatprep.subr.bf16.mxu1 %v1988_v51 }
 0x25c   :  { %1219 = vmatpush1.bf16.msra.mxu1 %v1986_v52 }
 0x25d   :  { %1220 = vmatprep.subr.bf16.mxu1 %v1991_v53 }
 0x260   :  { %1221 = vmatpush1.bf16.msra.mxu1 %v1989_v54 }
 0x261   :  { %1222 = vmatprep.subr.bf16.mxu1 %v1994_v55 }
 0x264   :  { %1223 = vmatpush1.bf16.msra.mxu1 %v1992_v56 }
 0x265   :  { %1224 = vmatprep.subr.bf16.mxu1 %v1997_v57 }
 0x268   :  { %1225 = vmatpush1.bf16.msra.mxu1 %v1995_v58 }
 0x269   :  { %1226 = vmatprep.subr.bf16.mxu1 %v2000_v59 }
 0x26c   :  { %1227 = vmatpush1.bf16.msra.mxu1 %v1998_v60 }
 0x26d   :  { %1228 = vmatprep.subr.bf16.mxu1 %v2003_v61 }
 0x270   :  { %1229 = vmatpush1.bf16.msra.mxu1 %v2001_v62 }
 0x271   :  { %1230 = vmatprep.subr.bf16.mxu1 %v2006_v63 }
 0x274   :  { %1231 = vmatpush1.bf16.msra.mxu1 %v2004_v0 }
 0x275   :  { %1232 = vmatprep.subr.bf16.mxu1 %v2009_v1 }
 0x278   :  { %1233 = vmatpush1.bf16.msra.mxu1 %v2007_v2 }
 0x279   :  { %1234 = vmatprep.subr.bf16.mxu1 %v2012_v4 }
 0x27c   :  { %1235 = vmatpush1.bf16.msra.mxu1 %v2010_v5 }
 0x27d   :  { %1236 = vmatprep.subr.bf16.mxu1 %v2015_v7 }
 0x280   :  { %1237 = vmatpush1.bf16.msra.mxu1 %v2013_v8 }
 0x281   :  { %1238 = vmatprep.subr.bf16.mxu1 %v2018_v10 }
 0x284   :  { %1239 = vmatpush1.bf16.msra.mxu1 %v2016_v11 }
 0x287   :  { %1241 = vmatmul.mubr.bf16.vlgmr.msra.gmra.mrb[4].mxu1 %v769_v21 }
 0x35a   :  { %v1242_v23 = vpop.f32.mrb[4].mxu1 }
 0x35b   :  { %v1781_v25 = vadd.f32 %v1242_v23, %v840_v19  ;;  %v1244_v26 = vpop.f32.mrb[5].mxu1 }
 0x35c   :  { %v1782_v27 = vadd.f32 %v1244_v26, %v844_v20  ;;  %v1246_v28 = vpop.f32.mrb[6].mxu1 }
 0x35d   :  { %v1249_v29 = vmax.f32 %v1781_v25, 0.0  ;;  %v1247_v30 = vpop.f32.mrb[7].mxu1 }
 0x35e   :  { %v1250_v31 = vmax.f32 %v1782_v27, 0.0 }
 0x35f   :  { %v1251_v34 = vpack.c.bf16 %v1249_v29, %v1249_v29 }
 0x360   :  { %v1252_v32 = vpack.c.bf16 %v1250_v31, %v1250_v31 }
 0x362   :  { %1420 = vmatprep.mubr.bf16.mxu0 %v1252_v32 }
 0x363   :  { %1421 = vmatmul.mubr.bf16.vlgmr.msra.gmra.mrb[8].mxu0 %v1251_v34 }
 0x364   :  { %1762 = vmatpush3.bf16.msra.mxu0 %v2035_v33  ;;  %1777 = vmatprep.mubr.msk.bf16.mxu0 %vm2221_vm0, %v2220_v17 }
 0x365   :  { %1763 = vmatprep.subr.bf16.mxu0 %v2220_v17 }
 0x368   :  { %1764 = vmatpush3.bf16.msra.mxu0 %v2036_v35 }
 0x369   :  { %1765 = vmatprep.subr.bf16.mxu0 %v2220_v17 }
 0x36c   :  { %1766 = vmatpush3.bf16.msra.mxu0 %v2037_v22 }
 0x36d   :  { %1767 = vmatprep.subr.bf16.mxu0 %v2220_v17 }
 0x370   :  { %1768 = vmatpush3.bf16.msra.mxu0 %v2038_v24 }
 0x371   :  { %1769 = vmatprep.subr.bf16.mxu0 %v2220_v17 }
 0x374   :  { %1770 = vmatpush3.bf16.msra.mxu0 %v2039_v36 }
 0x375   :  { %1771 = vmatprep.subr.bf16.mxu0 %v2220_v17 }
 0x378   :  { %1772 = vmatpush3.bf16.msra.mxu0 %v2040_v37 }
 0x379   :  { %1773 = vmatprep.subr.bf16.mxu0 %v2220_v17 }
 0x37c   :  { %1774 = vmatpush3.bf16.msra.mxu0 %v2041_v38 }
 0x37d   :  { %1775 = vmatprep.subr.bf16.mxu0 %v2220_v17 }
 0x380   :  { %1776 = vmatpush3.bf16.msra.mxu0 %v2042_v39 }
 0x436   :  { %v1746_v40 = vpop.f32.mrb[8].mxu0 }
 0x437   :  { %v1747_v42 = vpop.f32.mrb[9].mxu0 }
 0x438   :  { %v1748_v43 = vadd.f32 %v1747_v42, %v1746_v40  ;;  %v1749_v44 = vpop.f32.mrb[10].mxu0 }
 0x439   :  { %v1750_v45 = vpop.f32.mrb[11].mxu0 }
 0x43a   :  { %v1423_v46 = vadd.f32 %v1748_v43, %v1704_v41 }
 0x43c   :  { %v1428_v47 = vmax.f32 %v1423_v46, 0.0 }
 0x43e   :  { %v1429_v48 = vpack.c.bf16 %v1428_v47, %v1428_v47 }
 0x440   :  { %1778 = vmatmul.mubr.bf16.vlgmr.msra.gmra.mrb[12].mxu0 %v1429_v48 }
 0x513   :  { %v1535_v50 = vpop.f32.mrb[12].mxu0 }
 0x514   :  { %v1536_v51 = vadd.f32 %v1721_v49, %v1535_v50  ;;  %v1779_v52 = vpop.f32.mrb[13].mxu0 }
 0x515   :  { %v1538_v53 = vpop.f32.mrb[14].mxu0 }
 0x516   :  { %1541 = vst [vmem:[#allocation13] sm:$0xff] %v1536_v51  ;;  %v1780_v54 = vpop.f32.mrb[15].mxu0 }
 0x517   :  { %2186 = shalt.err (!%p2183_p10)
}
 0x518   :  { %s2187_s10 = scalar_lea.hbm %s2418_s11, 128 }
 0x519   :  { %p2188_p11 = scmp.ne.s32.totalorder %s2418_s11, %s2187_s10  ;;  %p2191_p12 = scmp.lt.u32.totalorder %s2187_s10, %s2418_s11 }
 0x51b   :  { %p2193_p13 = pnand %p2191_p12, %p2188_p11 }
 0x51d   :  { %2196 = shalt.err (!%p2193_p13)
}
 0x51e   :  { %1551 = dma.vmem_to_hbm [thread:$0]  %s1549_s19, 128, %s2418_s11, [#allocation4]  }
 0x51f   :  { %2205 = dma.done.wait [#allocation4], 128  }
 0x520   :  { %2206 = vsyncadd [#allocation4], 4294967168 }
 0x521   :  { %1555 = vsyncpa [#allocation3], 1 }
 0x522   :  { %1556 = vsyncpa [#allocation6], 1 }
 0x523   :  { %1557 = vsyncpa [#allocation9], 1 }
 0x524   :  { %1558 = vsyncpa [#allocation12], 1 }
 0x525   :  { %1559 = vsyncpa [#allocation4], 1 }

</bundles_post_ra>
